<compile_context>
chip_gen: v5e
topology: v5e:2x2
jax: 0.10.0
libtpu: 0.0.40
codegen_flags: <defaults>
</compile_context>

<pallas_src>
import jax
import jax.numpy as jnp
from jax.experimental import pallas as pl
from jax.experimental.pallas import tpu as pltpu


def _make_kv_update_kernel(BH, S, T, D, chunk):
    """Build the update kernel for static shapes.

    Kernel refs (in order):
      meta_ref                 SMEM (T+1,) int32   [pos_0..pos_{T-1}, is_contig]
      k_new, v_new             ANY  (BH, T, D)     new rows in HBM
      k_cache_in, v_cache_in   ANY  (BH, S, D)     aliased inputs (never read)
      k_out, v_out             ANY  (BH, S, D)     aliased outputs (the caches)
      sems                     DMA semaphores, shape (2, chunk)
    """
    needs_guard = (T % chunk) != 0

    def kernel(meta_ref, k_new, v_new, k_cache_in, v_cache_in,
               k_out, v_out, sems):
        del k_cache_in, v_cache_in          # aliased to k_out/v_out; never touched
        which = pl.program_id(0)            # 0 -> update K, 1 -> update V
        base = pl.program_id(1) * chunk     # first token of this chunk
        is_contig = meta_ref[T]             # 1 iff input_pos == arange(p0, p0+T)

        def update_one(new_ref, out_ref, widx):
            # ---- Fast path: contiguous positions -> one strided slab DMA
            #      (all heads x all tokens of this chunk) straight HBM->HBM.
            @pl.when(is_contig == 1)
            def _():
                p0 = meta_ref[0]
                if needs_guard:
                    # Clamp the last chunk so the slab stays in-bounds; the
                    # overlap rewrites identical data (benign).
                    cbase = jnp.minimum(base, T - chunk)
                else:
                    cbase = base
                cp = pltpu.make_async_copy(
                    new_ref.at[:, pl.ds(cbase, chunk), :],
                    out_ref.at[:, pl.ds(p0 + cbase, chunk), :],
                    sems.at[widx, 0])
                cp.start()
                cp.wait()

            # ---- Scatter path: one strided HBM->HBM DMA per token, covering
            #      all BH heads in a single descriptor. Start all, then wait.
            @pl.when(is_contig == 0)
            def _():
                # Hoist every SMEM position read before any DMA .wait().
                ps = []
                for i in range(chunk):
                    t = base + i
                    idx = jnp.minimum(t, T - 1) if needs_guard else t
                    ps.append(meta_ref[idx])

                def mk(i, t):
                    return pltpu.make_async_copy(
                        new_ref.at[:, pl.ds(t, 1), :],
                        out_ref.at[:, pl.ds(ps[i], 1), :],
                        sems.at[widx, i])

                for i in range(chunk):
                    t = base + i
                    if needs_guard:
                        pl.when(t < T)(lambda i=i, t=t: mk(i, t).start())
                    else:
                        mk(i, t).start()
                for i in range(chunk):
                    t = base + i
                    if needs_guard:
                        pl.when(t < T)(lambda i=i, t=t: mk(i, t).wait())
                    else:
                        mk(i, t).wait()

        @pl.when(which == 0)
        def _():
            update_one(k_new, k_out, 0)

        @pl.when(which == 1)
        def _():
            update_one(v_new, v_out, 1)

    return kernel


def kv_cache_update(k_cache, v_cache, input_pos, k_new, v_new,
                    *, max_tokens_per_step=32):
    """Semantics of KVCache.forward:
         k_cache.index_copy_(2, input_pos, k_new)
         v_cache.index_copy_(2, input_pos, v_new)
       k_cache/v_cache: (B, H, S, D);  k_new/v_new: (B, H, T, D);  input_pos: (T,).
       Returns the updated (k, v) caches in (B, H, S, D).

       For a true in-place update wrap in jax.jit(..., donate_argnums=(0, 1));
       otherwise XLA copies the cache once to satisfy the output aliasing."""
    B, H, S, D = k_cache.shape
    Bn, Hn, T, Dn = k_new.shape
    assert (Bn, Hn, Dn) == (B, H, D)
    assert v_cache.shape == k_cache.shape and v_new.shape == k_new.shape
    BH = B * H

    # `self.k = self.k.to(k.dtype)` — only pay this (full-cache copy) when the
    # dtypes actually differ; the module semantics require the cache to take
    # the new dtype, so in that case a new cache buffer is unavoidable.
    if k_cache.dtype != k_new.dtype:
        k_cache = k_cache.astype(k_new.dtype)
    if v_cache.dtype != v_new.dtype:
        v_cache = v_cache.astype(v_new.dtype)

    # Free (bitcast) reshapes — native layout is kept; the head/batch axes are
    # folded so one strided DMA descriptor covers all heads of a token.
    k_cache3 = k_cache.reshape(BH, S, D)
    v_cache3 = v_cache.reshape(BH, S, D)
    k_new3 = k_new.reshape(BH, T, D)
    v_new3 = v_new.reshape(BH, T, D)

    pos = input_pos.astype(jnp.int32)
    is_contig = jnp.all(pos == pos[0] + jnp.arange(T, dtype=jnp.int32))
    meta = jnp.concatenate([pos, is_contig.astype(jnp.int32).reshape(1)])

    chunk = min(T, max_tokens_per_step)
    num_chunks = pl.cdiv(T, chunk)

    kernel = _make_kv_update_kernel(BH, S, T, D, chunk)

    grid_spec = pltpu.PrefetchScalarGridSpec(
        num_scalar_prefetch=1,
        grid=(2, num_chunks),
        # Everything stays in HBM; the kernel moves only the touched rows.
        in_specs=[pl.BlockSpec(memory_space=pl.ANY)] * 4,
        out_specs=[pl.BlockSpec(memory_space=pl.ANY)] * 2,
        scratch_shapes=[pltpu.SemaphoreType.DMA((2, chunk))],
    )

    k_out3, v_out3 = pl.pallas_call(
        kernel,
        grid_spec=grid_spec,
        out_shape=(
            jax.ShapeDtypeStruct((BH, S, D), k_new.dtype),
            jax.ShapeDtypeStruct((BH, S, D), v_new.dtype),
        ),
        # operands: 0=meta, 1=k_new3, 2=v_new3, 3=k_cache3, 4=v_cache3
        input_output_aliases={3: 0, 4: 1},
        # Axis 0 splits K vs V (v7x: one tensor per TensorCore even for T=1);
        # axis 1 splits independent token chunks. Both touch disjoint rows.
        compiler_params=pltpu.CompilerParams(
            dimension_semantics=("parallel", "parallel")),
    )(meta, k_new3, v_new3, k_cache3, v_cache3)

    return (k_out3.reshape(B, H, S, D), v_out3.reshape(B, H, S, D))


if __name__ == "__main__":
    key = jax.random.PRNGKey(0)
    B, H, S, T, D = 2, 2, 8, 4, 128
    dtype = jnp.float32

    k_key, v_key = jax.random.split(key)
    k_new = jax.random.normal(k_key, (B, H, T, D), dtype=dtype)
    v_new = jax.random.normal(v_key, (B, H, T, D), dtype=dtype)

    update = jax.jit(kv_cache_update, donate_argnums=(0, 1))

    # ---- Test 1: scattered (non-contiguous) positions -> per-token DMA path.
    # register_buffer('k'/'v', torch.zeros(...)) -> deterministic zero caches.
    k_cache = jnp.zeros((B, H, S, D), dtype=dtype)
    v_cache = jnp.zeros((B, H, S, D), dtype=dtype)
    input_pos = jnp.array([1, 3, 4, 6], dtype=jnp.int32)
    # References computed BEFORE the call (cache buffers are donated).
    k_ref = k_cache.at[:, :, input_pos, :].set(k_new)
    v_ref = v_cache.at[:, :, input_pos, :].set(v_new)
    k_out, v_out = update(k_cache, v_cache, input_pos, k_new, v_new)
    jax.block_until_ready((k_out, v_out))
    assert k_out.shape == (B, H, S, D) and v_out.shape == (B, H, S, D)
    assert jnp.allclose(k_out, k_ref), "k mismatch (scatter path)"
    assert jnp.allclose(v_out, v_ref), "v mismatch (scatter path)"

    # ---- Test 2: contiguous positions -> slab fast path.
    k_cache2 = jnp.zeros((B, H, S, D), dtype=dtype)
    v_cache2 = jnp.zeros((B, H, S, D), dtype=dtype)
    input_pos2 = jnp.array([2, 3, 4, 5], dtype=jnp.int32)
    k_ref2 = k_cache2.at[:, :, input_pos2, :].set(k_new)
    v_ref2 = v_cache2.at[:, :, input_pos2, :].set(v_new)
    k_out2, v_out2 = update(k_cache2, v_cache2, input_pos2, k_new, v_new)
    jax.block_until_ready((k_out2, v_out2))
    assert jnp.allclose(k_out2, k_ref2), "k mismatch (contiguous path)"
    assert jnp.allclose(v_out2, v_ref2), "v mismatch (contiguous path)"

    print("KERNEL_OK")
</pallas_src>

<mosaic_0001>
module attributes {stable_mosaic.version = 11 : i64} {
  func.func @kernel(%arg0: i32, %arg1: i32, %arg2: memref<5xi32, #tpu.memory_space<smem>>, %arg3: memref<4x4x128xf32, #tpu.memory_space<any>>, %arg4: memref<4x4x128xf32, #tpu.memory_space<any>>, %arg5: memref<4x8x128xf32, #tpu.memory_space<any>>, %arg6: memref<4x8x128xf32, #tpu.memory_space<any>>, %arg7: memref<4x8x128xf32, #tpu.memory_space<any>>, %arg8: memref<4x8x128xf32, #tpu.memory_space<any>>, %arg9: memref<2x4x!tpu.dma_semaphore, #tpu.memory_space<semaphore_mem>>) attributes {dimension_semantics = [#tpu.dimension_semantics<parallel>, #tpu.dimension_semantics<parallel>], iteration_bounds = array<i64: 2, 1>, scalar_prefetch = 1 : i64, scratch_operands = 1 : i64, tpu.core_type = #tpu.core_type<tc>, window_params = [{}, {}, {}, {}, {}, {}]} {
    %c4_i32 = arith.constant 4 : i32
    %0 = arith.muli %arg1, %c4_i32 : i32
    %c4 = arith.constant 4 : index
    %1 = memref.load %arg2[%c4] : memref<5xi32, #tpu.memory_space<smem>>
    %c0_i32 = arith.constant 0 : i32
    %2 = arith.cmpi eq, %arg0, %c0_i32 : i32
    %3 = arith.extui %2 : i1 to i32
    %c0_i32_0 = arith.constant 0 : i32
    %4 = arith.cmpi ne, %3, %c0_i32_0 : i32
    scf.if %4 {
      %c1_i32_2 = arith.constant 1 : i32
      %8 = arith.cmpi eq, %1, %c1_i32_2 : i32
      %9 = arith.extui %8 : i1 to i32
      %c0_i32_3 = arith.constant 0 : i32
      %10 = arith.cmpi ne, %9, %c0_i32_3 : i32
      scf.if %10 {
        %c0 = arith.constant 0 : index
        %14 = memref.load %arg2[%c0] : memref<5xi32, #tpu.memory_space<smem>>
        %15 = arith.addi %14, %0 : i32
        %c0_i32_6 = arith.constant 0 : i32
        %c0_i32_7 = arith.constant 0 : i32
        %c0_i32_8 = arith.constant 0 : i32
        %c0_i32_9 = arith.constant 0 : i32
        %16 = tpu.memref_slice %arg3[%c0_i32_8, %0, %c0_i32_9] : memref<4x4x128xf32, #tpu.memory_space<any>> -> memref<4x4x128xf32, #tpu.memory_space<any>>
        %c0_i32_10 = arith.constant 0 : i32
        %c0_i32_11 = arith.constant 0 : i32
        %17 = tpu.memref_slice %arg7[%c0_i32_10, %15, %c0_i32_11] : memref<4x8x128xf32, #tpu.memory_space<any>> -> memref<4x4x128xf32, #tpu.memory_space<any>>
        %18 = tpu.memref_slice %arg9[%c0_i32_6, %c0_i32_7] : memref<2x4x!tpu.dma_semaphore, #tpu.memory_space<semaphore_mem>> -> memref<1x1x!tpu.dma_semaphore, #tpu.memory_space<semaphore_mem>>
        %19 = tpu.memref_squeeze %18 : memref<1x1x!tpu.dma_semaphore, #tpu.memory_space<semaphore_mem>> -> memref<!tpu.dma_semaphore, #tpu.memory_space<semaphore_mem>>
        tpu.enqueue_dma source(%16 : memref<4x4x128xf32, #tpu.memory_space<any>>) target(%17 : memref<4x4x128xf32, #tpu.memory_space<any>>) target_semaphore(%19 : memref<!tpu.dma_semaphore, #tpu.memory_space<semaphore_mem>>)
        %c0_i32_12 = arith.constant 0 : i32
        %c0_i32_13 = arith.constant 0 : i32
        %c0_i32_14 = arith.constant 0 : i32
        %c0_i32_15 = arith.constant 0 : i32
        %20 = tpu.memref_slice %arg3[%c0_i32_14, %0, %c0_i32_15] : memref<4x4x128xf32, #tpu.memory_space<any>> -> memref<4x4x128xf32, #tpu.memory_space<any>>
        %c0_i32_16 = arith.constant 0 : i32
        %c0_i32_17 = arith.constant 0 : i32
        %21 = tpu.memref_slice %arg7[%c0_i32_16, %15, %c0_i32_17] : memref<4x8x128xf32, #tpu.memory_space<any>> -> memref<4x4x128xf32, #tpu.memory_space<any>>
        %22 = tpu.memref_slice %arg9[%c0_i32_12, %c0_i32_13] : memref<2x4x!tpu.dma_semaphore, #tpu.memory_space<semaphore_mem>> -> memref<1x1x!tpu.dma_semaphore, #tpu.memory_space<semaphore_mem>>
        %23 = tpu.memref_squeeze %22 : memref<1x1x!tpu.dma_semaphore, #tpu.memory_space<semaphore_mem>> -> memref<!tpu.dma_semaphore, #tpu.memory_space<semaphore_mem>>
        tpu.wait_dma2 semaphore(%23 : memref<!tpu.dma_semaphore, #tpu.memory_space<semaphore_mem>>) src(%20 : memref<4x4x128xf32, #tpu.memory_space<any>>) dst(%21 : memref<4x4x128xf32, #tpu.memory_space<any>>)
      } else {
      }
      %c0_i32_4 = arith.constant 0 : i32
      %11 = arith.cmpi eq, %1, %c0_i32_4 : i32
      %12 = arith.extui %11 : i1 to i32
      %c0_i32_5 = arith.constant 0 : i32
      %13 = arith.cmpi ne, %12, %c0_i32_5 : i32
      scf.if %13 {
        %c0_i32_6 = arith.constant 0 : i32
        %14 = arith.addi %0, %c0_i32_6 : i32
        %15 = arith.index_cast %14 : i32 to index
        %16 = memref.load %arg2[%15] : memref<5xi32, #tpu.memory_space<smem>>
        %c1_i32_7 = arith.constant 1 : i32
        %17 = arith.addi %0, %c1_i32_7 : i32
        %18 = arith.index_cast %17 : i32 to index
        %19 = memref.load %arg2[%18] : memref<5xi32, #tpu.memory_space<smem>>
        %c2_i32 = arith.constant 2 : i32
        %20 = arith.addi %0, %c2_i32 : i32
        %21 = arith.index_cast %20 : i32 to index
        %22 = memref.load %arg2[%21] : memref<5xi32, #tpu.memory_space<smem>>
        %c3_i32 = arith.constant 3 : i32
        %23 = arith.addi %0, %c3_i32 : i32
        %24 = arith.index_cast %23 : i32 to index
        %25 = memref.load %arg2[%24] : memref<5xi32, #tpu.memory_space<smem>>
        %c0_i32_8 = arith.constant 0 : i32
        %26 = arith.addi %0, %c0_i32_8 : i32
        %c0_i32_9 = arith.constant 0 : i32
        %c0_i32_10 = arith.constant 0 : i32
        %c0_i32_11 = arith.constant 0 : i32
        %c0_i32_12 = arith.constant 0 : i32
        %27 = tpu.memref_slice %arg3[%c0_i32_11, %26, %c0_i32_12] : memref<4x4x128xf32, #tpu.memory_space<any>> -> memref<4x1x128xf32, #tpu.memory_space<any>>
        %c0_i32_13 = arith.constant 0 : i32
        %c0_i32_14 = arith.constant 0 : i32
        %28 = tpu.memref_slice %arg7[%c0_i32_13, %16, %c0_i32_14] : memref<4x8x128xf32, #tpu.memory_space<any>> -> memref<4x1x128xf32, #tpu.memory_space<any>>
        %29 = tpu.memref_slice %arg9[%c0_i32_9, %c0_i32_10] : memref<2x4x!tpu.dma_semaphore, #tpu.memory_space<semaphore_mem>> -> memref<1x1x!tpu.dma_semaphore, #tpu.memory_space<semaphore_mem>>
        %30 = tpu.memref_squeeze %29 : memref<1x1x!tpu.dma_semaphore, #tpu.memory_space<semaphore_mem>> -> memref<!tpu.dma_semaphore, #tpu.memory_space<semaphore_mem>>
        tpu.enqueue_dma source(%27 : memref<4x1x128xf32, #tpu.memory_space<any>>) target(%28 : memref<4x1x128xf32, #tpu.memory_space<any>>) target_semaphore(%30 : memref<!tpu.dma_semaphore, #tpu.memory_space<semaphore_mem>>)
        %c1_i32_15 = arith.constant 1 : i32
        %31 = arith.addi %0, %c1_i32_15 : i32
        %c0_i32_16 = arith.constant 0 : i32
        %c1_i32_17 = arith.constant 1 : i32
        %c0_i32_18 = arith.constant 0 : i32
        %c0_i32_19 = arith.constant 0 : i32
        %32 = tpu.memref_slice %arg3[%c0_i32_18, %31, %c0_i32_19] : memref<4x4x128xf32, #tpu.memory_space<any>> -> memref<4x1x128xf32, #tpu.memory_space<any>>
        %c0_i32_20 = arith.constant 0 : i32
        %c0_i32_21 = arith.constant 0 : i32
        %33 = tpu.memref_slice %arg7[%c0_i32_20, %19, %c0_i32_21] : memref<4x8x128xf32, #tpu.memory_space<any>> -> memref<4x1x128xf32, #tpu.memory_space<any>>
        %34 = tpu.memref_slice %arg9[%c0_i32_16, %c1_i32_17] : memref<2x4x!tpu.dma_semaphore, #tpu.memory_space<semaphore_mem>> -> memref<1x1x!tpu.dma_semaphore, #tpu.memory_space<semaphore_mem>>
        %35 = tpu.memref_squeeze %34 : memref<1x1x!tpu.dma_semaphore, #tpu.memory_space<semaphore_mem>> -> memref<!tpu.dma_semaphore, #tpu.memory_space<semaphore_mem>>
        tpu.enqueue_dma source(%32 : memref<4x1x128xf32, #tpu.memory_space<any>>) target(%33 : memref<4x1x128xf32, #tpu.memory_space<any>>) target_semaphore(%35 : memref<!tpu.dma_semaphore, #tpu.memory_space<semaphore_mem>>)
        %c2_i32_22 = arith.constant 2 : i32
        %36 = arith.addi %0, %c2_i32_22 : i32
        %c0_i32_23 = arith.constant 0 : i32
        %c2_i32_24 = arith.constant 2 : i32
        %c0_i32_25 = arith.constant 0 : i32
        %c0_i32_26 = arith.constant 0 : i32
        %37 = tpu.memref_slice %arg3[%c0_i32_25, %36, %c0_i32_26] : memref<4x4x128xf32, #tpu.memory_space<any>> -> memref<4x1x128xf32, #tpu.memory_space<any>>
        %c0_i32_27 = arith.constant 0 : i32
        %c0_i32_28 = arith.constant 0 : i32
        %38 = tpu.memref_slice %arg7[%c0_i32_27, %22, %c0_i32_28] : memref<4x8x128xf32, #tpu.memory_space<any>> -> memref<4x1x128xf32, #tpu.memory_space<any>>
        %39 = tpu.memref_slice %arg9[%c0_i32_23, %c2_i32_24] : memref<2x4x!tpu.dma_semaphore, #tpu.memory_space<semaphore_mem>> -> memref<1x1x!tpu.dma_semaphore, #tpu.memory_space<semaphore_mem>>
        %40 = tpu.memref_squeeze %39 : memref<1x1x!tpu.dma_semaphore, #tpu.memory_space<semaphore_mem>> -> memref<!tpu.dma_semaphore, #tpu.memory_space<semaphore_mem>>
        tpu.enqueue_dma source(%37 : memref<4x1x128xf32, #tpu.memory_space<any>>) target(%38 : memref<4x1x128xf32, #tpu.memory_space<any>>) target_semaphore(%40 : memref<!tpu.dma_semaphore, #tpu.memory_space<semaphore_mem>>)
        %c3_i32_29 = arith.constant 3 : i32
        %41 = arith.addi %0, %c3_i32_29 : i32
        %c0_i32_30 = arith.constant 0 : i32
        %c3_i32_31 = arith.constant 3 : i32
        %c0_i32_32 = arith.constant 0 : i32
        %c0_i32_33 = arith.constant 0 : i32
        %42 = tpu.memref_slice %arg3[%c0_i32_32, %41, %c0_i32_33] : memref<4x4x128xf32, #tpu.memory_space<any>> -> memref<4x1x128xf32, #tpu.memory_space<any>>
        %c0_i32_34 = arith.constant 0 : i32
        %c0_i32_35 = arith.constant 0 : i32
        %43 = tpu.memref_slice %arg7[%c0_i32_34, %25, %c0_i32_35] : memref<4x8x128xf32, #tpu.memory_space<any>> -> memref<4x1x128xf32, #tpu.memory_space<any>>
        %44 = tpu.memref_slice %arg9[%c0_i32_30, %c3_i32_31] : memref<2x4x!tpu.dma_semaphore, #tpu.memory_space<semaphore_mem>> -> memref<1x1x!tpu.dma_semaphore, #tpu.memory_space<semaphore_mem>>
        %45 = tpu.memref_squeeze %44 : memref<1x1x!tpu.dma_semaphore, #tpu.memory_space<semaphore_mem>> -> memref<!tpu.dma_semaphore, #tpu.memory_space<semaphore_mem>>
        tpu.enqueue_dma source(%42 : memref<4x1x128xf32, #tpu.memory_space<any>>) target(%43 : memref<4x1x128xf32, #tpu.memory_space<any>>) target_semaphore(%45 : memref<!tpu.dma_semaphore, #tpu.memory_space<semaphore_mem>>)
        %c0_i32_36 = arith.constant 0 : i32
        %46 = arith.addi %0, %c0_i32_36 : i32
        %c0_i32_37 = arith.constant 0 : i32
        %c0_i32_38 = arith.constant 0 : i32
        %c0_i32_39 = arith.constant 0 : i32
        %c0_i32_40 = arith.constant 0 : i32
        %47 = tpu.memref_slice %arg3[%c0_i32_39, %46, %c0_i32_40] : memref<4x4x128xf32, #tpu.memory_space<any>> -> memref<4x1x128xf32, #tpu.memory_space<any>>
        %c0_i32_41 = arith.constant 0 : i32
        %c0_i32_42 = arith.constant 0 : i32
        %48 = tpu.memref_slice %arg7[%c0_i32_41, %16, %c0_i32_42] : memref<4x8x128xf32, #tpu.memory_space<any>> -> memref<4x1x128xf32, #tpu.memory_space<any>>
        %49 = tpu.memref_slice %arg9[%c0_i32_37, %c0_i32_38] : memref<2x4x!tpu.dma_semaphore, #tpu.memory_space<semaphore_mem>> -> memref<1x1x!tpu.dma_semaphore, #tpu.memory_space<semaphore_mem>>
        %50 = tpu.memref_squeeze %49 : memref<1x1x!tpu.dma_semaphore, #tpu.memory_space<semaphore_mem>> -> memref<!tpu.dma_semaphore, #tpu.memory_space<semaphore_mem>>
        tpu.wait_dma2 semaphore(%50 : memref<!tpu.dma_semaphore, #tpu.memory_space<semaphore_mem>>) src(%47 : memref<4x1x128xf32, #tpu.memory_space<any>>) dst(%48 : memref<4x1x128xf32, #tpu.memory_space<any>>)
        %c1_i32_43 = arith.constant 1 : i32
        %51 = arith.addi %0, %c1_i32_43 : i32
        %c0_i32_44 = arith.constant 0 : i32
        %c1_i32_45 = arith.constant 1 : i32
        %c0_i32_46 = arith.constant 0 : i32
        %c0_i32_47 = arith.constant 0 : i32
        %52 = tpu.memref_slice %arg3[%c0_i32_46, %51, %c0_i32_47] : memref<4x4x128xf32, #tpu.memory_space<any>> -> memref<4x1x128xf32, #tpu.memory_space<any>>
        %c0_i32_48 = arith.constant 0 : i32
        %c0_i32_49 = arith.constant 0 : i32
        %53 = tpu.memref_slice %arg7[%c0_i32_48, %19, %c0_i32_49] : memref<4x8x128xf32, #tpu.memory_space<any>> -> memref<4x1x128xf32, #tpu.memory_space<any>>
        %54 = tpu.memref_slice %arg9[%c0_i32_44, %c1_i32_45] : memref<2x4x!tpu.dma_semaphore, #tpu.memory_space<semaphore_mem>> -> memref<1x1x!tpu.dma_semaphore, #tpu.memory_space<semaphore_mem>>
        %55 = tpu.memref_squeeze %54 : memref<1x1x!tpu.dma_semaphore, #tpu.memory_space<semaphore_mem>> -> memref<!tpu.dma_semaphore, #tpu.memory_space<semaphore_mem>>
        tpu.wait_dma2 semaphore(%55 : memref<!tpu.dma_semaphore, #tpu.memory_space<semaphore_mem>>) src(%52 : memref<4x1x128xf32, #tpu.memory_space<any>>) dst(%53 : memref<4x1x128xf32, #tpu.memory_space<any>>)
        %c2_i32_50 = arith.constant 2 : i32
        %56 = arith.addi %0, %c2_i32_50 : i32
        %c0_i32_51 = arith.constant 0 : i32
        %c2_i32_52 = arith.constant 2 : i32
        %c0_i32_53 = arith.constant 0 : i32
        %c0_i32_54 = arith.constant 0 : i32
        %57 = tpu.memref_slice %arg3[%c0_i32_53, %56, %c0_i32_54] : memref<4x4x128xf32, #tpu.memory_space<any>> -> memref<4x1x128xf32, #tpu.memory_space<any>>
        %c0_i32_55 = arith.constant 0 : i32
        %c0_i32_56 = arith.constant 0 : i32
        %58 = tpu.memref_slice %arg7[%c0_i32_55, %22, %c0_i32_56] : memref<4x8x128xf32, #tpu.memory_space<any>> -> memref<4x1x128xf32, #tpu.memory_space<any>>
        %59 = tpu.memref_slice %arg9[%c0_i32_51, %c2_i32_52] : memref<2x4x!tpu.dma_semaphore, #tpu.memory_space<semaphore_mem>> -> memref<1x1x!tpu.dma_semaphore, #tpu.memory_space<semaphore_mem>>
        %60 = tpu.memref_squeeze %59 : memref<1x1x!tpu.dma_semaphore, #tpu.memory_space<semaphore_mem>> -> memref<!tpu.dma_semaphore, #tpu.memory_space<semaphore_mem>>
        tpu.wait_dma2 semaphore(%60 : memref<!tpu.dma_semaphore, #tpu.memory_space<semaphore_mem>>) src(%57 : memref<4x1x128xf32, #tpu.memory_space<any>>) dst(%58 : memref<4x1x128xf32, #tpu.memory_space<any>>)
        %c3_i32_57 = arith.constant 3 : i32
        %61 = arith.addi %0, %c3_i32_57 : i32
        %c0_i32_58 = arith.constant 0 : i32
        %c3_i32_59 = arith.constant 3 : i32
        %c0_i32_60 = arith.constant 0 : i32
        %c0_i32_61 = arith.constant 0 : i32
        %62 = tpu.memref_slice %arg3[%c0_i32_60, %61, %c0_i32_61] : memref<4x4x128xf32, #tpu.memory_space<any>> -> memref<4x1x128xf32, #tpu.memory_space<any>>
        %c0_i32_62 = arith.constant 0 : i32
        %c0_i32_63 = arith.constant 0 : i32
        %63 = tpu.memref_slice %arg7[%c0_i32_62, %25, %c0_i32_63] : memref<4x8x128xf32, #tpu.memory_space<any>> -> memref<4x1x128xf32, #tpu.memory_space<any>>
        %64 = tpu.memref_slice %arg9[%c0_i32_58, %c3_i32_59] : memref<2x4x!tpu.dma_semaphore, #tpu.memory_space<semaphore_mem>> -> memref<1x1x!tpu.dma_semaphore, #tpu.memory_space<semaphore_mem>>
        %65 = tpu.memref_squeeze %64 : memref<1x1x!tpu.dma_semaphore, #tpu.memory_space<semaphore_mem>> -> memref<!tpu.dma_semaphore, #tpu.memory_space<semaphore_mem>>
        tpu.wait_dma2 semaphore(%65 : memref<!tpu.dma_semaphore, #tpu.memory_space<semaphore_mem>>) src(%62 : memref<4x1x128xf32, #tpu.memory_space<any>>) dst(%63 : memref<4x1x128xf32, #tpu.memory_space<any>>)
      } else {
      }
    } else {
    }
    %c1_i32 = arith.constant 1 : i32
    %5 = arith.cmpi eq, %arg0, %c1_i32 : i32
    %6 = arith.extui %5 : i1 to i32
    %c0_i32_1 = arith.constant 0 : i32
    %7 = arith.cmpi ne, %6, %c0_i32_1 : i32
    scf.if %7 {
      %c1_i32_2 = arith.constant 1 : i32
      %8 = arith.cmpi eq, %1, %c1_i32_2 : i32
      %9 = arith.extui %8 : i1 to i32
      %c0_i32_3 = arith.constant 0 : i32
      %10 = arith.cmpi ne, %9, %c0_i32_3 : i32
      scf.if %10 {
        %c0 = arith.constant 0 : index
        %14 = memref.load %arg2[%c0] : memref<5xi32, #tpu.memory_space<smem>>
        %15 = arith.addi %14, %0 : i32
        %c1_i32_6 = arith.constant 1 : i32
        %c0_i32_7 = arith.constant 0 : i32
        %c0_i32_8 = arith.constant 0 : i32
        %c0_i32_9 = arith.constant 0 : i32
        %16 = tpu.memref_slice %arg4[%c0_i32_8, %0, %c0_i32_9] : memref<4x4x128xf32, #tpu.memory_space<any>> -> memref<4x4x128xf32, #tpu.memory_space<any>>
        %c0_i32_10 = arith.constant 0 : i32
        %c0_i32_11 = arith.constant 0 : i32
        %17 = tpu.memref_slice %arg8[%c0_i32_10, %15, %c0_i32_11] : memref<4x8x128xf32, #tpu.memory_space<any>> -> memref<4x4x128xf32, #tpu.memory_space<any>>
        %18 = tpu.memref_slice %arg9[%c1_i32_6, %c0_i32_7] : memref<2x4x!tpu.dma_semaphore, #tpu.memory_space<semaphore_mem>> -> memref<1x1x!tpu.dma_semaphore, #tpu.memory_space<semaphore_mem>>
        %19 = tpu.memref_squeeze %18 : memref<1x1x!tpu.dma_semaphore, #tpu.memory_space<semaphore_mem>> -> memref<!tpu.dma_semaphore, #tpu.memory_space<semaphore_mem>>
        tpu.enqueue_dma source(%16 : memref<4x4x128xf32, #tpu.memory_space<any>>) target(%17 : memref<4x4x128xf32, #tpu.memory_space<any>>) target_semaphore(%19 : memref<!tpu.dma_semaphore, #tpu.memory_space<semaphore_mem>>)
        %c1_i32_12 = arith.constant 1 : i32
        %c0_i32_13 = arith.constant 0 : i32
        %c0_i32_14 = arith.constant 0 : i32
        %c0_i32_15 = arith.constant 0 : i32
        %20 = tpu.memref_slice %arg4[%c0_i32_14, %0, %c0_i32_15] : memref<4x4x128xf32, #tpu.memory_space<any>> -> memref<4x4x128xf32, #tpu.memory_space<any>>
        %c0_i32_16 = arith.constant 0 : i32
        %c0_i32_17 = arith.constant 0 : i32
        %21 = tpu.memref_slice %arg8[%c0_i32_16, %15, %c0_i32_17] : memref<4x8x128xf32, #tpu.memory_space<any>> -> memref<4x4x128xf32, #tpu.memory_space<any>>
        %22 = tpu.memref_slice %arg9[%c1_i32_12, %c0_i32_13] : memref<2x4x!tpu.dma_semaphore, #tpu.memory_space<semaphore_mem>> -> memref<1x1x!tpu.dma_semaphore, #tpu.memory_space<semaphore_mem>>
        %23 = tpu.memref_squeeze %22 : memref<1x1x!tpu.dma_semaphore, #tpu.memory_space<semaphore_mem>> -> memref<!tpu.dma_semaphore, #tpu.memory_space<semaphore_mem>>
        tpu.wait_dma2 semaphore(%23 : memref<!tpu.dma_semaphore, #tpu.memory_space<semaphore_mem>>) src(%20 : memref<4x4x128xf32, #tpu.memory_space<any>>) dst(%21 : memref<4x4x128xf32, #tpu.memory_space<any>>)
      } else {
      }
      %c0_i32_4 = arith.constant 0 : i32
      %11 = arith.cmpi eq, %1, %c0_i32_4 : i32
      %12 = arith.extui %11 : i1 to i32
      %c0_i32_5 = arith.constant 0 : i32
      %13 = arith.cmpi ne, %12, %c0_i32_5 : i32
      scf.if %13 {
        %c0_i32_6 = arith.constant 0 : i32
        %14 = arith.addi %0, %c0_i32_6 : i32
        %15 = arith.index_cast %14 : i32 to index
        %16 = memref.load %arg2[%15] : memref<5xi32, #tpu.memory_space<smem>>
        %c1_i32_7 = arith.constant 1 : i32
        %17 = arith.addi %0, %c1_i32_7 : i32
        %18 = arith.index_cast %17 : i32 to index
        %19 = memref.load %arg2[%18] : memref<5xi32, #tpu.memory_space<smem>>
        %c2_i32 = arith.constant 2 : i32
        %20 = arith.addi %0, %c2_i32 : i32
        %21 = arith.index_cast %20 : i32 to index
        %22 = memref.load %arg2[%21] : memref<5xi32, #tpu.memory_space<smem>>
        %c3_i32 = arith.constant 3 : i32
        %23 = arith.addi %0, %c3_i32 : i32
        %24 = arith.index_cast %23 : i32 to index
        %25 = memref.load %arg2[%24] : memref<5xi32, #tpu.memory_space<smem>>
        %c0_i32_8 = arith.constant 0 : i32
        %26 = arith.addi %0, %c0_i32_8 : i32
        %c1_i32_9 = arith.constant 1 : i32
        %c0_i32_10 = arith.constant 0 : i32
        %c0_i32_11 = arith.constant 0 : i32
        %c0_i32_12 = arith.constant 0 : i32
        %27 = tpu.memref_slice %arg4[%c0_i32_11, %26, %c0_i32_12] : memref<4x4x128xf32, #tpu.memory_space<any>> -> memref<4x1x128xf32, #tpu.memory_space<any>>
        %c0_i32_13 = arith.constant 0 : i32
        %c0_i32_14 = arith.constant 0 : i32
        %28 = tpu.memref_slice %arg8[%c0_i32_13, %16, %c0_i32_14] : memref<4x8x128xf32, #tpu.memory_space<any>> -> memref<4x1x128xf32, #tpu.memory_space<any>>
        %29 = tpu.memref_slice %arg9[%c1_i32_9, %c0_i32_10] : memref<2x4x!tpu.dma_semaphore, #tpu.memory_space<semaphore_mem>> -> memref<1x1x!tpu.dma_semaphore, #tpu.memory_space<semaphore_mem>>
        %30 = tpu.memref_squeeze %29 : memref<1x1x!tpu.dma_semaphore, #tpu.memory_space<semaphore_mem>> -> memref<!tpu.dma_semaphore, #tpu.memory_space<semaphore_mem>>
        tpu.enqueue_dma source(%27 : memref<4x1x128xf32, #tpu.memory_space<any>>) target(%28 : memref<4x1x128xf32, #tpu.memory_space<any>>) target_semaphore(%30 : memref<!tpu.dma_semaphore, #tpu.memory_space<semaphore_mem>>)
        %c1_i32_15 = arith.constant 1 : i32
        %31 = arith.addi %0, %c1_i32_15 : i32
        %c1_i32_16 = arith.constant 1 : i32
        %c1_i32_17 = arith.constant 1 : i32
        %c0_i32_18 = arith.constant 0 : i32
        %c0_i32_19 = arith.constant 0 : i32
        %32 = tpu.memref_slice %arg4[%c0_i32_18, %31, %c0_i32_19] : memref<4x4x128xf32, #tpu.memory_space<any>> -> memref<4x1x128xf32, #tpu.memory_space<any>>
        %c0_i32_20 = arith.constant 0 : i32
        %c0_i32_21 = arith.constant 0 : i32
        %33 = tpu.memref_slice %arg8[%c0_i32_20, %19, %c0_i32_21] : memref<4x8x128xf32, #tpu.memory_space<any>> -> memref<4x1x128xf32, #tpu.memory_space<any>>
        %34 = tpu.memref_slice %arg9[%c1_i32_16, %c1_i32_17] : memref<2x4x!tpu.dma_semaphore, #tpu.memory_space<semaphore_mem>> -> memref<1x1x!tpu.dma_semaphore, #tpu.memory_space<semaphore_mem>>
        %35 = tpu.memref_squeeze %34 : memref<1x1x!tpu.dma_semaphore, #tpu.memory_space<semaphore_mem>> -> memref<!tpu.dma_semaphore, #tpu.memory_space<semaphore_mem>>
        tpu.enqueue_dma source(%32 : memref<4x1x128xf32, #tpu.memory_space<any>>) target(%33 : memref<4x1x128xf32, #tpu.memory_space<any>>) target_semaphore(%35 : memref<!tpu.dma_semaphore, #tpu.memory_space<semaphore_mem>>)
        %c2_i32_22 = arith.constant 2 : i32
        %36 = arith.addi %0, %c2_i32_22 : i32
        %c1_i32_23 = arith.constant 1 : i32
        %c2_i32_24 = arith.constant 2 : i32
        %c0_i32_25 = arith.constant 0 : i32
        %c0_i32_26 = arith.constant 0 : i32
        %37 = tpu.memref_slice %arg4[%c0_i32_25, %36, %c0_i32_26] : memref<4x4x128xf32, #tpu.memory_space<any>> -> memref<4x1x128xf32, #tpu.memory_space<any>>
        %c0_i32_27 = arith.constant 0 : i32
        %c0_i32_28 = arith.constant 0 : i32
        %38 = tpu.memref_slice %arg8[%c0_i32_27, %22, %c0_i32_28] : memref<4x8x128xf32, #tpu.memory_space<any>> -> memref<4x1x128xf32, #tpu.memory_space<any>>
        %39 = tpu.memref_slice %arg9[%c1_i32_23, %c2_i32_24] : memref<2x4x!tpu.dma_semaphore, #tpu.memory_space<semaphore_mem>> -> memref<1x1x!tpu.dma_semaphore, #tpu.memory_space<semaphore_mem>>
        %40 = tpu.memref_squeeze %39 : memref<1x1x!tpu.dma_semaphore, #tpu.memory_space<semaphore_mem>> -> memref<!tpu.dma_semaphore, #tpu.memory_space<semaphore_mem>>
        tpu.enqueue_dma source(%37 : memref<4x1x128xf32, #tpu.memory_space<any>>) target(%38 : memref<4x1x128xf32, #tpu.memory_space<any>>) target_semaphore(%40 : memref<!tpu.dma_semaphore, #tpu.memory_space<semaphore_mem>>)
        %c3_i32_29 = arith.constant 3 : i32
        %41 = arith.addi %0, %c3_i32_29 : i32
        %c1_i32_30 = arith.constant 1 : i32
        %c3_i32_31 = arith.constant 3 : i32
        %c0_i32_32 = arith.constant 0 : i32
        %c0_i32_33 = arith.constant 0 : i32
        %42 = tpu.memref_slice %arg4[%c0_i32_32, %41, %c0_i32_33] : memref<4x4x128xf32, #tpu.memory_space<any>> -> memref<4x1x128xf32, #tpu.memory_space<any>>
        %c0_i32_34 = arith.constant 0 : i32
        %c0_i32_35 = arith.constant 0 : i32
        %43 = tpu.memref_slice %arg8[%c0_i32_34, %25, %c0_i32_35] : memref<4x8x128xf32, #tpu.memory_space<any>> -> memref<4x1x128xf32, #tpu.memory_space<any>>
        %44 = tpu.memref_slice %arg9[%c1_i32_30, %c3_i32_31] : memref<2x4x!tpu.dma_semaphore, #tpu.memory_space<semaphore_mem>> -> memref<1x1x!tpu.dma_semaphore, #tpu.memory_space<semaphore_mem>>
        %45 = tpu.memref_squeeze %44 : memref<1x1x!tpu.dma_semaphore, #tpu.memory_space<semaphore_mem>> -> memref<!tpu.dma_semaphore, #tpu.memory_space<semaphore_mem>>
        tpu.enqueue_dma source(%42 : memref<4x1x128xf32, #tpu.memory_space<any>>) target(%43 : memref<4x1x128xf32, #tpu.memory_space<any>>) target_semaphore(%45 : memref<!tpu.dma_semaphore, #tpu.memory_space<semaphore_mem>>)
        %c0_i32_36 = arith.constant 0 : i32
        %46 = arith.addi %0, %c0_i32_36 : i32
        %c1_i32_37 = arith.constant 1 : i32
        %c0_i32_38 = arith.constant 0 : i32
        %c0_i32_39 = arith.constant 0 : i32
        %c0_i32_40 = arith.constant 0 : i32
        %47 = tpu.memref_slice %arg4[%c0_i32_39, %46, %c0_i32_40] : memref<4x4x128xf32, #tpu.memory_space<any>> -> memref<4x1x128xf32, #tpu.memory_space<any>>
        %c0_i32_41 = arith.constant 0 : i32
        %c0_i32_42 = arith.constant 0 : i32
        %48 = tpu.memref_slice %arg8[%c0_i32_41, %16, %c0_i32_42] : memref<4x8x128xf32, #tpu.memory_space<any>> -> memref<4x1x128xf32, #tpu.memory_space<any>>
        %49 = tpu.memref_slice %arg9[%c1_i32_37, %c0_i32_38] : memref<2x4x!tpu.dma_semaphore, #tpu.memory_space<semaphore_mem>> -> memref<1x1x!tpu.dma_semaphore, #tpu.memory_space<semaphore_mem>>
        %50 = tpu.memref_squeeze %49 : memref<1x1x!tpu.dma_semaphore, #tpu.memory_space<semaphore_mem>> -> memref<!tpu.dma_semaphore, #tpu.memory_space<semaphore_mem>>
        tpu.wait_dma2 semaphore(%50 : memref<!tpu.dma_semaphore, #tpu.memory_space<semaphore_mem>>) src(%47 : memref<4x1x128xf32, #tpu.memory_space<any>>) dst(%48 : memref<4x1x128xf32, #tpu.memory_space<any>>)
        %c1_i32_43 = arith.constant 1 : i32
        %51 = arith.addi %0, %c1_i32_43 : i32
        %c1_i32_44 = arith.constant 1 : i32
        %c1_i32_45 = arith.constant 1 : i32
        %c0_i32_46 = arith.constant 0 : i32
        %c0_i32_47 = arith.constant 0 : i32
        %52 = tpu.memref_slice %arg4[%c0_i32_46, %51, %c0_i32_47] : memref<4x4x128xf32, #tpu.memory_space<any>> -> memref<4x1x128xf32, #tpu.memory_space<any>>
        %c0_i32_48 = arith.constant 0 : i32
        %c0_i32_49 = arith.constant 0 : i32
        %53 = tpu.memref_slice %arg8[%c0_i32_48, %19, %c0_i32_49] : memref<4x8x128xf32, #tpu.memory_space<any>> -> memref<4x1x128xf32, #tpu.memory_space<any>>
        %54 = tpu.memref_slice %arg9[%c1_i32_44, %c1_i32_45] : memref<2x4x!tpu.dma_semaphore, #tpu.memory_space<semaphore_mem>> -> memref<1x1x!tpu.dma_semaphore, #tpu.memory_space<semaphore_mem>>
        %55 = tpu.memref_squeeze %54 : memref<1x1x!tpu.dma_semaphore, #tpu.memory_space<semaphore_mem>> -> memref<!tpu.dma_semaphore, #tpu.memory_space<semaphore_mem>>
        tpu.wait_dma2 semaphore(%55 : memref<!tpu.dma_semaphore, #tpu.memory_space<semaphore_mem>>) src(%52 : memref<4x1x128xf32, #tpu.memory_space<any>>) dst(%53 : memref<4x1x128xf32, #tpu.memory_space<any>>)
        %c2_i32_50 = arith.constant 2 : i32
        %56 = arith.addi %0, %c2_i32_50 : i32
        %c1_i32_51 = arith.constant 1 : i32
        %c2_i32_52 = arith.constant 2 : i32
        %c0_i32_53 = arith.constant 0 : i32
        %c0_i32_54 = arith.constant 0 : i32
        %57 = tpu.memref_slice %arg4[%c0_i32_53, %56, %c0_i32_54] : memref<4x4x128xf32, #tpu.memory_space<any>> -> memref<4x1x128xf32, #tpu.memory_space<any>>
        %c0_i32_55 = arith.constant 0 : i32
        %c0_i32_56 = arith.constant 0 : i32
        %58 = tpu.memref_slice %arg8[%c0_i32_55, %22, %c0_i32_56] : memref<4x8x128xf32, #tpu.memory_space<any>> -> memref<4x1x128xf32, #tpu.memory_space<any>>
        %59 = tpu.memref_slice %arg9[%c1_i32_51, %c2_i32_52] : memref<2x4x!tpu.dma_semaphore, #tpu.memory_space<semaphore_mem>> -> memref<1x1x!tpu.dma_semaphore, #tpu.memory_space<semaphore_mem>>
        %60 = tpu.memref_squeeze %59 : memref<1x1x!tpu.dma_semaphore, #tpu.memory_space<semaphore_mem>> -> memref<!tpu.dma_semaphore, #tpu.memory_space<semaphore_mem>>
        tpu.wait_dma2 semaphore(%60 : memref<!tpu.dma_semaphore, #tpu.memory_space<semaphore_mem>>) src(%57 : memref<4x1x128xf32, #tpu.memory_space<any>>) dst(%58 : memref<4x1x128xf32, #tpu.memory_space<any>>)
        %c3_i32_57 = arith.constant 3 : i32
        %61 = arith.addi %0, %c3_i32_57 : i32
        %c1_i32_58 = arith.constant 1 : i32
        %c3_i32_59 = arith.constant 3 : i32
        %c0_i32_60 = arith.constant 0 : i32
        %c0_i32_61 = arith.constant 0 : i32
        %62 = tpu.memref_slice %arg4[%c0_i32_60, %61, %c0_i32_61] : memref<4x4x128xf32, #tpu.memory_space<any>> -> memref<4x1x128xf32, #tpu.memory_space<any>>
        %c0_i32_62 = arith.constant 0 : i32
        %c0_i32_63 = arith.constant 0 : i32
        %63 = tpu.memref_slice %arg8[%c0_i32_62, %25, %c0_i32_63] : memref<4x8x128xf32, #tpu.memory_space<any>> -> memref<4x1x128xf32, #tpu.memory_space<any>>
        %64 = tpu.memref_slice %arg9[%c1_i32_58, %c3_i32_59] : memref<2x4x!tpu.dma_semaphore, #tpu.memory_space<semaphore_mem>> -> memref<1x1x!tpu.dma_semaphore, #tpu.memory_space<semaphore_mem>>
        %65 = tpu.memref_squeeze %64 : memref<1x1x!tpu.dma_semaphore, #tpu.memory_space<semaphore_mem>> -> memref<!tpu.dma_semaphore, #tpu.memory_space<semaphore_mem>>
        tpu.wait_dma2 semaphore(%65 : memref<!tpu.dma_semaphore, #tpu.memory_space<semaphore_mem>>) src(%62 : memref<4x1x128xf32, #tpu.memory_space<any>>) dst(%63 : memref<4x1x128xf32, #tpu.memory_space<any>>)
      } else {
      }
    } else {
    }
    return
  }
}

</mosaic_0001>

<bundles_post_ra>
// kernel: kv_cache_update.1
= control target key start
LH: loop header
LB: loop body
LE: loop exit
PB: predicated region body
PF: predicated region fallthrough
CT: control target
= control target key end

     0   :  { %s620_s24 = smov [#allocation4]   ;;  %s948_s0 = inlined_call_operand.vmem [shape: s32[5], index: 0, kind: input, shape index: {}]   ;;  %s949_s1 = inlined_call_operand.hbm [shape: f32[4,4,128], index: 1, kind: input, shape index: {}]   ;;  %s950_s2 = inlined_call_operand.hbm [shape: f32[4,4,128], index: 2, kind: input, shape index: {}]   ;;  %s951_s3 = inlined_call_operand.hbm [shape: f32[4,8,128], index: 3, kind: input, shape index: {}, may-alias: {3,5}]   ;;  %s952_s4 = inlined_call_operand.hbm [shape: f32[4,8,128], index: 4, kind: input, shape index: {}, may-alias: {4,6}]   ;;  %s953_s5 = inlined_call_operand.hbm [shape: f32[4,8,128], index: 5, kind: output, shape index: {0}, may-alias: {3,5}]   ;;  %s954_s6 = inlined_call_operand.hbm [shape: f32[4,8,128], index: 6, kind: output, shape index: {1}, may-alias: {4,6}]  }
   0x1   :  { %s13_s23 = sshll.u32 %s948_s0, 4  ;;  %s14_s23 = int_to_ptr.vmem [resolvable:$true] %s13_s23 }
   0x2   :  { %16 = dma.vmem_to_smem %s14_s23, 16, %s620_s24, [#allocation3] }
   0x3   :  { %570 = dma.done.wait [#allocation3], 16 }
   0x4   :  { %571 = vsyncadd [#allocation3], 4294967280 }
   0x5   :  { %19 = sfence }
   0x6   :  { %s695_s3 = smov 0   ;;  %s697_s25 = smov 0  }
   0x7 LB: > { %s31_s0 = sadd.s32 1, %s614_s3  ;;  %s706_s4 = sld [smem:[#allocation4 + $0x4]]  ;;  %s618_s25 = sphi %s697_s25, %s25_s25   ;;  %s614_s3 = sphi %s695_s3, %s955_s3  }
   0x8   : > { %p33_p0 = scmp.ge.s32.totalorder %s31_s0, 2  ;;  %p419_p1 = scmp.ne.s32.totalorder %s614_s3, 0 }
   0xa   : > { %s957_s0 = smov (%p33_p0, %s31_s0), 0  ;;  %40 = sbr.rel (%p419_p1) target bundleno = 59 (0x3b), region = 12 }
   0xd   : > { %p493_p2 = scmp.eq.s32.totalorder (!%p419_p1), %s706_s4, 1 }
   0xf   : > { %s45_s26 = sld [smem:[#allocation4]]  ;;  %s53_s29 = sshll.u32 %s949_s1, 4  ;;  %s719_s29 = int_to_ptr.hbm [resolvable:$true] %s53_s29 }
  0x10   : > { %s621_s30 = smov 64   ;;  %s622_s7 = smov 128  }
  0x11   : > { %440 = sst [smem:[#allocation6]] (%p493_p2), %s621_s30  ;;  %s623_s8 = smov 4  }
  0x12   : > { %441 = sst [smem:[#allocation6 + $0x1]] (%p493_p2), %s622_s7  ;;  %s624_s13 = smov [#allocation2]  }
  0x13   : > { %442 = sst [smem:[#allocation6 + $0x2]] (%p493_p2), %s623_s8  ;;  %s625_s14 = smov [#allocation5]  }
  0x14   : > { %s626_s15 = smov 0  }
  0x15   : > { %s48_s11 = scalar_lea.hbm %s953_s5, %s45_s26 }
  0x16   : > { %s55_s12 = sshll.u32 %s48_s11, 4  ;;  %s56_s12 = int_to_ptr.hbm [resolvable:$true] %s55_s12 }
  0x17   : > { %443 = dma.general (%p493_p2), %s719_s29, 256, %s56_s12, %s624_s13, %s625_s14, [#allocation6], %s626_s15, 0  }
  0x18   : > { %573 = dma.done.wait (%p493_p2), [#allocation2], 256 }
  0x19   : > { %575 = vsyncadd (%p493_p2), [#allocation2], 4294967040  ;;  %p494_p3 = scmp.eq.s32.totalorder %s706_s4, 0 }
  0x1a   : > { %s75_s16 = sld [smem:[#allocation4]]  ;;  %s627_s20 = smov 64  }
  0x1b   : > { %s422_s17 = sld [smem:[#allocation4 + $0x1]]  ;;  %s628_s21 = smov 128  }
  0x1c   : > { %s734_s18 = sld [smem:[#allocation4 + $0x2]]  ;;  %s629_s26 = smov 1  }
  0x1d   : > { %s736_s19 = sld [smem:[#allocation4 + $0x3]]  ;;  %s380_s7 = scalar_lea.hbm %s949_s1, 1 }
  0x1e   : > { %446 = sst [smem:[#allocation8]] (%p494_p3), %s627_s20  ;;  %s630_s11 = smov [#allocation2]  }
  0x1f   : > { %447 = sst [smem:[#allocation8 + $0x1]] (%p494_p3), %s628_s21  ;;  %s631_s12 = smov [#allocation7]  }
  0x20   : > { %s83_s24 = scalar_lea.hbm %s953_s5, %s75_s16  ;;  %448 = sst [smem:[#allocation8 + $0x2]] (%p494_p3), %s629_s26 }
  0x21   : > { %s90_s27 = sshll.u32 %s83_s24, 4  ;;  %s103_s10 = scalar_lea.hbm %s953_s5, %s422_s17  ;;  %s91_s27 = int_to_ptr.hbm [resolvable:$true] %s90_s27 }
  0x22   : > { %s632_s13 = smov 0   ;;  %s109_s14 = sshll.u32 %s380_s7, 4  ;;  %s110_s14 = int_to_ptr.hbm [resolvable:$true] %s109_s14 }
  0x23   : > { %449 = dma.general (%p494_p3), %s719_s29, 64, %s91_s27, %s630_s11, %s631_s12, [#allocation8], %s632_s13, 0  }
  0x24   : > { %450 = sst [smem:[#allocation10]] (%p494_p3), %s627_s20  ;;  %s111_s15 = sshll.u32 %s103_s10, 4  ;;  %s112_s15 = int_to_ptr.hbm [resolvable:$true] %s111_s15 }
  0x25   : > { %451 = sst [smem:[#allocation10 + $0x1]] (%p494_p3), %s628_s21  ;;  %s384_s29 = scalar_lea.hbm %s949_s1, 2 }
  0x26   : > { %452 = sst [smem:[#allocation10 + $0x2]] (%p494_p3), %s629_s26  ;;  %s633_s22 = smov [#allocation2 + $0x1]  }
  0x27   : > { %s634_s23 = smov [#allocation9]   ;;  %s124_s28 = scalar_lea.hbm %s953_s5, %s734_s18 }
  0x28   : > { %453 = dma.general (%p494_p3), %s110_s14, 64, %s112_s15, %s633_s22, %s634_s23, [#allocation10], %s632_s13, 0  }
  0x29   : > { %454 = sst [smem:[#allocation12]] (%p494_p3), %s627_s20  ;;  %s130_s30 = sshll.u32 %s384_s29, 4  ;;  %s131_s30 = int_to_ptr.hbm [resolvable:$true] %s130_s30 }
  0x2a   : > { %455 = sst [smem:[#allocation12 + $0x1]] (%p494_p3), %s628_s21  ;;  %s132_s7 = sshll.u32 %s124_s28, 4  ;;  %s133_s7 = int_to_ptr.hbm [resolvable:$true] %s132_s7 }
  0x2b   : > { %456 = sst [smem:[#allocation12 + $0x2]] (%p494_p3), %s629_s26  ;;  %s635_s8 = smov [#allocation2 + $0x2]  }
  0x2c   : > { %s636_s9 = smov [#allocation11]   ;;  %s388_s11 = scalar_lea.hbm %s949_s1, 3 }
  0x2d   : > { %457 = dma.general (%p494_p3), %s131_s30, 64, %s133_s7, %s635_s8, %s636_s9, [#allocation12], %s632_s13, 0  }
  0x2e   : > { %458 = sst [smem:[#allocation14]] (%p494_p3), %s627_s20  ;;  %s145_s15 = scalar_lea.hbm %s953_s5, %s736_s19 }
  0x2f   : > { %459 = sst [smem:[#allocation14 + $0x1]] (%p494_p3), %s628_s21  ;;  %s151_s16 = sshll.u32 %s388_s11, 4  ;;  %s152_s16 = int_to_ptr.hbm [resolvable:$true] %s151_s16 }
  0x30   : > { %460 = sst [smem:[#allocation14 + $0x2]] (%p494_p3), %s629_s26  ;;  %s153_s17 = sshll.u32 %s145_s15, 4  ;;  %s154_s17 = int_to_ptr.hbm [resolvable:$true] %s153_s17 }
  0x31   : > { %s637_s29 = smov [#allocation2 + $0x3]   ;;  %s638_s20 = smov [#allocation13]  }
  0x32   : > { %461 = dma.general (%p494_p3), %s152_s16, 64, %s154_s17, %s637_s29, %s638_s20, [#allocation14], %s632_s13, 0  }
  0x33   : > { %577 = dma.done.wait (%p494_p3), [#allocation2], 64 }
  0x34   : > { %579 = vsyncadd (%p494_p3), [#allocation2], 4294967232 }
  0x35   : > { %581 = dma.done.wait (%p494_p3), [#allocation2 + $0x1], 64 }
  0x36   : > { %583 = vsyncadd (%p494_p3), [#allocation2 + $0x1], 4294967232 }
  0x37   : > { %585 = dma.done.wait (%p494_p3), [#allocation2 + $0x2], 64 }
  0x38   : > { %587 = vsyncadd (%p494_p3), [#allocation2 + $0x2], 4294967232 }
  0x39   : > { %589 = dma.done.wait (%p494_p3), [#allocation2 + $0x3], 64 }
  0x3a   : > { %591 = vsyncadd (%p494_p3), [#allocation2 + $0x3], 4294967232 }
  0x3b PF: > { %p425_p4 = scmp.ne.s32.totalorder %s614_s3, 1 }
  0x3c   : > { %p495_p5 = scmp.eq.s32.totalorder (!%p425_p4), %s706_s4, 1 }
  0x3d   : > { %178 = sbr.rel (%p425_p4) target bundleno = 110 (0x6e), region = 24 }
  0x42   : > { %s183_s19 = sld [smem:[#allocation4]]  ;;  %s192_s13 = sshll.u32 %s950_s2, 4  ;;  %s835_s13 = int_to_ptr.hbm [resolvable:$true] %s192_s13 }
  0x43   : > { %s639_s22 = smov 64   ;;  %s640_s23 = smov 128  }
  0x44   : > { %467 = sst [smem:[#allocation16]] (%p495_p5), %s639_s22  ;;  %s641_s3 = smov 4  }
  0x45   : > { %468 = sst [smem:[#allocation16 + $0x1]] (%p495_p5), %s640_s23  ;;  %s642_s7 = smov [#allocation2 + $0x4]  }
  0x46   : > { %469 = sst [smem:[#allocation16 + $0x2]] (%p495_p5), %s641_s3  ;;  %s643_s8 = smov [#allocation15]  }
  0x47   : > { %s644_s9 = smov 0  }
  0x48   : > { %s186_s28 = scalar_lea.hbm %s954_s6, %s183_s19 }
  0x49   : > { %s194_s30 = sshll.u32 %s186_s28, 4  ;;  %s195_s30 = int_to_ptr.hbm [resolvable:$true] %s194_s30 }
  0x4a   : > { %470 = dma.general (%p495_p5), %s835_s13, 256, %s195_s30, %s642_s7, %s643_s8, [#allocation16], %s644_s9, 0  }
  0x4b   : > { %593 = dma.done.wait (%p495_p5), [#allocation2 + $0x4], 256 }
  0x4c   : > { %595 = vsyncadd (%p495_p5), [#allocation2 + $0x4], 4294967040  ;;  %p496_p6 = scmp.eq.s32.totalorder %s706_s4, 0 }
  0x4d   : > { %s214_s18 = sld [smem:[#allocation4]]  ;;  %s645_s14 = smov 64  }
  0x4e   : > { %s428_s10 = sld [smem:[#allocation4 + $0x1]]  ;;  %s646_s15 = smov 128  }
  0x4f   : > { %s850_s11 = sld [smem:[#allocation4 + $0x2]]  ;;  %s647_s20 = smov 1  }
  0x50   : > { %s852_s12 = sld [smem:[#allocation4 + $0x3]]  ;;  %s400_s22 = scalar_lea.hbm %s950_s2, 1 }
  0x51   : > { %473 = sst [smem:[#allocation18]] (%p496_p6), %s645_s14  ;;  %s648_s27 = smov [#allocation2 + $0x4]  }
  0x52   : > { %474 = sst [smem:[#allocation18 + $0x1]] (%p496_p6), %s646_s15  ;;  %s649_s28 = smov [#allocation17]  }
  0x53   : > { %s222_s29 = scalar_lea.hbm %s954_s6, %s214_s18  ;;  %475 = sst [smem:[#allocation18 + $0x2]] (%p496_p6), %s647_s20 }
  0x54   : > { %s230_s19 = sshll.u32 %s222_s29, 4  ;;  %s243_s24 = scalar_lea.hbm %s954_s6, %s428_s10  ;;  %s231_s19 = int_to_ptr.hbm [resolvable:$true] %s230_s19 }
  0x55   : > { %s650_s30 = smov 0   ;;  %s249_s7 = sshll.u32 %s400_s22, 4  ;;  %s250_s7 = int_to_ptr.hbm [resolvable:$true] %s249_s7 }
  0x56   : > { %476 = dma.general (%p496_p6), %s835_s13, 64, %s231_s19, %s648_s27, %s649_s28, [#allocation18], %s650_s30, 0  }
  0x57   : > { %477 = sst [smem:[#allocation20]] (%p496_p6), %s645_s14  ;;  %s251_s8 = sshll.u32 %s243_s24, 4  ;;  %s252_s8 = int_to_ptr.hbm [resolvable:$true] %s251_s8 }
  0x58   : > { %478 = sst [smem:[#allocation20 + $0x1]] (%p496_p6), %s646_s15  ;;  %s404_s13 = scalar_lea.hbm %s950_s2, 2 }
  0x59   : > { %479 = sst [smem:[#allocation20 + $0x2]] (%p496_p6), %s647_s20  ;;  %s651_s10 = smov [#allocation2 + $0x5]  }
  0x5a   : > { %s652_s16 = smov [#allocation19]   ;;  %s264_s19 = scalar_lea.hbm %s954_s6, %s850_s11 }
  0x5b   : > { %480 = dma.general (%p496_p6), %s250_s7, 64, %s252_s8, %s651_s10, %s652_s16, [#allocation20], %s650_s30, 0  }
  0x5c   : > { %481 = sst [smem:[#allocation22]] (%p496_p6), %s645_s14  ;;  %s270_s21 = sshll.u32 %s404_s13, 4  ;;  %s271_s21 = int_to_ptr.hbm [resolvable:$true] %s270_s21 }
  0x5d   : > { %482 = sst [smem:[#allocation22 + $0x1]] (%p496_p6), %s646_s15  ;;  %s272_s26 = sshll.u32 %s264_s19, 4  ;;  %s273_s26 = int_to_ptr.hbm [resolvable:$true] %s272_s26 }
  0x5e   : > { %483 = sst [smem:[#allocation22 + $0x2]] (%p496_p6), %s647_s20  ;;  %s653_s22 = smov [#allocation2 + $0x6]  }
  0x5f   : > { %s654_s23 = smov [#allocation21]   ;;  %s408_s24 = scalar_lea.hbm %s950_s2, 3 }
  0x60   : > { %484 = dma.general (%p496_p6), %s271_s21, 64, %s273_s26, %s653_s22, %s654_s23, [#allocation22], %s650_s30, 0  }
  0x61   : > { %485 = sst [smem:[#allocation24]] (%p496_p6), %s645_s14  ;;  %s285_s7 = scalar_lea.hbm %s954_s6, %s852_s12 }
  0x62   : > { %486 = sst [smem:[#allocation24 + $0x1]] (%p496_p6), %s646_s15  ;;  %s291_s8 = sshll.u32 %s408_s24, 4  ;;  %s292_s8 = int_to_ptr.hbm [resolvable:$true] %s291_s8 }
  0x63   : > { %487 = sst [smem:[#allocation24 + $0x2]] (%p496_p6), %s647_s20  ;;  %s293_s9 = sshll.u32 %s285_s7, 4  ;;  %s294_s9 = int_to_ptr.hbm [resolvable:$true] %s293_s9 }
  0x64   : > { %s655_s18 = smov [#allocation2 + $0x7]   ;;  %s656_s14 = smov [#allocation23]  }
  0x65   : > { %488 = dma.general (%p496_p6), %s292_s8, 64, %s294_s9, %s655_s18, %s656_s14, [#allocation24], %s650_s30, 0  }
  0x66   : > { %597 = dma.done.wait (%p496_p6), [#allocation2 + $0x4], 64 }
  0x67   : > { %599 = vsyncadd (%p496_p6), [#allocation2 + $0x4], 4294967232 }
  0x68   : > { %601 = dma.done.wait (%p496_p6), [#allocation2 + $0x5], 64 }
  0x69   : > { %603 = vsyncadd (%p496_p6), [#allocation2 + $0x5], 4294967232 }
  0x6a   : > { %605 = dma.done.wait (%p496_p6), [#allocation2 + $0x6], 64 }
  0x6b   : > { %607 = vsyncadd (%p496_p6), [#allocation2 + $0x6], 4294967232 }
  0x6c   : > { %609 = dma.done.wait (%p496_p6), [#allocation2 + $0x7], 64 }
  0x6d   : > { %611 = vsyncadd (%p496_p6), [#allocation2 + $0x7], 4294967232 }
  0x6e PF: > { %s25_s25 = sadd.s32 1, %s618_s25   ;;  %s955_s3 = smov %s957_s0 }
  0x6f   : > { %p22_p7 = scmp.ge.s32.totalorder %s25_s25, 2  }
  0x71   :  { %24 = sbr.rel (!%p22_p7) target bundleno = 7 (0x7), region = 98 }
  0x76   :  { %315 = vsyncmov [#allocation2] }
  0x79   :  { %s316_s12 = vpop.sfrf %315 }
  0x7a   :  { %p431_p8 = scmp.ne.s32.totalorder %s316_s12, 0 }
  0x7c   :  { %320 = shalt.err (%p431_p8)  }
  0x7d   :  { %322 = vsyncmov [#allocation2 + $0x1] }
  0x80   :  { %s323_s15 = vpop.sfrf %322 }
  0x81   :  { %p432_p9 = scmp.ne.s32.totalorder %s323_s15, 0 }
  0x83   :  { %327 = shalt.err (%p432_p9)  }
  0x84   :  { %329 = vsyncmov [#allocation2 + $0x2] }
  0x87   :  { %s330_s4 = vpop.sfrf %329 }
  0x88   :  { %p433_p10 = scmp.ne.s32.totalorder %s330_s4, 0 }
  0x8a   :  { %334 = shalt.err (%p433_p10)  }
  0x8b   :  { %336 = vsyncmov [#allocation2 + $0x3] }
  0x8e   :  { %s337_s20 = vpop.sfrf %336 }
  0x8f   :  { %p434_p11 = scmp.ne.s32.totalorder %s337_s20, 0 }
  0x91   :  { %341 = shalt.err (%p434_p11)  }
  0x92   :  { %343 = vsyncmov [#allocation2 + $0x4] }
  0x95   :  { %s344_s0 = vpop.sfrf %343 }
  0x96   :  { %p435_p12 = scmp.ne.s32.totalorder %s344_s0, 0 }
  0x98   :  { %348 = shalt.err (%p435_p12)  }
  0x99   :  { %350 = vsyncmov [#allocation2 + $0x5] }
  0x9c   :  { %s351_s1 = vpop.sfrf %350 }
  0x9d   :  { %p436_p13 = scmp.ne.s32.totalorder %s351_s1, 0 }
  0x9f   :  { %355 = shalt.err (%p436_p13)  }
  0xa0   :  { %357 = vsyncmov [#allocation2 + $0x6] }
  0xa3   :  { %s358_s2 = vpop.sfrf %357 }
  0xa4   :  { %p437_p0 = scmp.ne.s32.totalorder %s358_s2, 0 }
  0xa6   :  { %362 = shalt.err (%p437_p0)  }
  0xa7   :  { %364 = vsyncmov [#allocation2 + $0x7] }
  0xaa   :  { %s365_s5 = vpop.sfrf %364 }
  0xab   :  { %p438_p1 = scmp.ne.s32.totalorder %s365_s5, 0 }
  0xad   :  { %369 = shalt.err (%p438_p1)  }

</bundles_post_ra>
